<compile_context>
chip_gen: v7x
topology: tpu7x:2x2x1
jax: 0.10.0
libtpu: 0.0.40
codegen_flags: <defaults>
</compile_context>

<pallas_src>
import functools

import jax
import jax.numpy as jnp
from jax import lax
from jax.experimental import pallas as pl
from jax.experimental.pallas import tpu as pltpu

_LANE = 128
_SUBLANE = 8


def _round_up(x, m):
    return (x + m - 1) // m * m


def _policy_kernel(sd_p, cols, head_r, action_dim, log_std_min, log_std_max,
                   xT_ref, w_ref, out_ref):
    # xT_ref : [SD_P, TB]  transposed activations: (state rows | ones row | 0-pad)
    # w_ref  : [2*COLS + HEAD_R, W] packed transposed slab:
    #   rows [0, COLS)                -> augmented W1^T (b1 folded via ones row)
    #   rows [COLS, 2*COLS)           -> augmented W2^T (b2 folded)
    #   rows [2*COLS, 2*COLS+HEAD_R)  -> fused heads [Wm^T ; Ws^T] (+ biases)
    # out_ref: [HEAD_R, TB]  rows [0,AD)=mean, [AD,2AD)=std, rest unused.
    xT = xT_ref[...]
    w1t = w_ref[0:cols, 0:sd_p]
    w2t = w_ref[cols:2 * cols, 0:cols]
    wht = w_ref[2 * cols:2 * cols + head_r, 0:cols]

    cdt = w_ref.dtype  # compute dtype for MXU operands (f32 or bf16)

    h1 = jnp.maximum(jnp.dot(w1t, xT, preferred_element_type=jnp.float32), 0.0)
    h1 = h1.astype(cdt)                                   # [COLS, TB]
    h2 = jnp.maximum(jnp.dot(w2t, h1, preferred_element_type=jnp.float32), 0.0)
    h2 = h2.astype(cdt)                                   # [COLS, TB]
    z = jnp.dot(wht, h2, preferred_element_type=jnp.float32)  # [HEAD_R, TB] f32

    # log_std path: clamp then softplus (the module passes threshold=10).
    zc = jnp.clip(z, log_std_min, log_std_max)
    if log_std_max > 10.0:
        sp = jnp.where(zc > 10.0, zc, jnp.log1p(jnp.exp(zc)))
    else:
        # branch statically dead after clipping to log_std_max <= 10
        sp = jnp.log1p(jnp.exp(zc))

    # Small (HEAD_R, TB) row mask: mean rows keep z, std rows get softplus.
    row = lax.broadcasted_iota(jnp.int32, z.shape, 0)
    out_ref[...] = jnp.where(row < action_dim, z, sp)


def pack_params(params, *, compute_dtype=jnp.float32):
    """One-time packing of (W1,b1,W2,b2,Wm,bm,Ws,bs) into a single slab.

    Call once per parameter version and reuse the result across forwards.
    """
    w1, b1, w2, b2, wm, bm, ws, bs = params
    state_dim, layer_dim = w1.shape
    action_dim = wm.shape[1]

    f32 = jnp.float32
    SD_P = _round_up(state_dim + 1, _LANE)       # +1 for the ones (bias) row
    COLS = _round_up(layer_dim + 1, _LANE)
    HEAD_R = _round_up(2 * action_dim, 16)       # mult of 16 -> bf16-tile aligned
    W = max(SD_P, COLS)

    w1t = jnp.zeros((COLS, W), f32)
    w1t = w1t.at[:layer_dim, :state_dim].set(w1.T.astype(f32))
    w1t = w1t.at[:layer_dim, state_dim].set(b1.astype(f32))
    w1t = w1t.at[layer_dim, state_dim].set(1.0)          # keep ones row alive

    w2t = jnp.zeros((COLS, W), f32)
    w2t = w2t.at[:layer_dim, :layer_dim].set(w2.T.astype(f32))
    w2t = w2t.at[:layer_dim, layer_dim].set(b2.astype(f32))
    w2t = w2t.at[layer_dim, layer_dim].set(1.0)

    wht = jnp.zeros((HEAD_R, W), f32)
    wht = wht.at[:action_dim, :layer_dim].set(wm.T.astype(f32))
    wht = wht.at[:action_dim, layer_dim].set(bm.astype(f32))
    wht = wht.at[action_dim:2 * action_dim, :layer_dim].set(ws.T.astype(f32))
    wht = wht.at[action_dim:2 * action_dim, layer_dim].set(bs.astype(f32))

    return jnp.concatenate([w1t, w2t, wht], axis=0).astype(compute_dtype)


def policy_forward(state, w_slab, *, action_dim,
                   log_std_min=-10.0, log_std_max=2.0):
    """state: [B, state_dim] f32, w_slab from pack_params.

    Returns (mean, std), each [B, action_dim] float32.
    """
    B, state_dim = state.shape
    rows, W = w_slab.shape
    HEAD_R = _round_up(2 * action_dim, 16)
    COLS = (rows - HEAD_R) // 2
    SD_P = _round_up(state_dim + 1, _LANE)
    assert rows == 2 * COLS + HEAD_R and SD_P <= W

    # ---- batch tiling (lanes carry batch in the transposed layout) --------
    B8 = _round_up(B, _SUBLANE)
    if B8 <= 256:
        TB = B8                                   # single-tile small-batch path
    else:
        # >= 2 grid steps so v7x's 2 TensorCores both get work; TB multiple of
        # 128 keeps the (SD_P, TB)/(HEAD_R, TB) blocks lane-aligned; cap 512.
        TB = min(512, max(_LANE, (B8 // 2) // _LANE * _LANE))
    B_P = _round_up(B8, TB)

    cdt = w_slab.dtype
    # Transposed, bias-augmented activations: [SD_P, B_P].
    x_aug = jnp.concatenate(
        [state.astype(jnp.float32), jnp.ones((B, 1), jnp.float32)], axis=1)
    xT = jnp.pad(x_aug.T, ((0, SD_P - (state_dim + 1)), (0, B_P - B)))
    xT = xT.astype(cdt)

    kernel = functools.partial(_policy_kernel, SD_P, COLS, HEAD_R, action_dim,
                               float(log_std_min), float(log_std_max))

    cost = pl.CostEstimate(
        flops=2 * B_P * (COLS * SD_P + COLS * COLS + HEAD_R * COLS),
        transcendentals=2 * B_P * HEAD_R,
        bytes_accessed=(xT.size * xT.dtype.itemsize
                        + w_slab.size * w_slab.dtype.itemsize
                        + HEAD_R * B_P * 4),
    )

    fused = pl.pallas_call(
        kernel,
        out_shape=jax.ShapeDtypeStruct((HEAD_R, B_P), jnp.float32),
        grid=(B_P // TB,),
        in_specs=[
            pl.BlockSpec((SD_P, TB), lambda i: (0, i)),
            pl.BlockSpec((rows, W), lambda i: (0, 0)),   # resident weight slab
        ],
        out_specs=pl.BlockSpec((HEAD_R, TB), lambda i: (0, i)),
        compiler_params=pltpu.CompilerParams(
            dimension_semantics=("parallel",)),
        cost_estimate=cost,
    )(xT, w_slab)

    ms = fused[:2 * action_dim, :B].T                    # [B, 2*AD]
    return ms[:, :action_dim], ms[:, action_dim:]        # mean, std


def init_params(key, state_dim, layer_dim, action_dim, init_w=0.003):
    """Deterministic synthetic init mirroring the PyTorch module's __init__."""
    ks = jax.random.split(key, 8)

    def u(k, shape, lo, hi):
        return jax.random.uniform(k, shape, jnp.float32, lo, hi)

    lim1 = 1.0 / (state_dim ** 0.5)
    lim2 = 1.0 / (layer_dim ** 0.5)
    w1 = u(ks[0], (state_dim, layer_dim), -lim1, lim1)
    b1 = u(ks[1], (layer_dim,), -lim1, lim1)
    w2 = u(ks[2], (layer_dim, layer_dim), -lim2, lim2)
    b2 = u(ks[3], (layer_dim,), -lim2, lim2)
    wm = u(ks[4], (layer_dim, action_dim), -init_w, init_w)
    bm = u(ks[5], (action_dim,), -init_w, init_w)
    ws = u(ks[6], (layer_dim, action_dim), -init_w, init_w)
    bs = u(ks[7], (action_dim,), -init_w, init_w)
    return (w1, b1, w2, b2, wm, bm, ws, bs)


def _reference_forward(state, params, log_std_min=-10.0, log_std_max=2.0):
    w1, b1, w2, b2, wm, bm, ws, bs = params
    h1 = jnp.maximum(state @ w1 + b1, 0.0)
    h2 = jnp.maximum(h1 @ w2 + b2, 0.0)
    mean = h2 @ wm + bm
    z = jnp.clip(h2 @ ws + bs, log_std_min, log_std_max)
    std = jnp.where(z > 10.0, z, jnp.log1p(jnp.exp(z)))   # softplus, threshold=10
    return mean, std


# TODO(synk): evaluate/evaluate_multiple/get_action sample from
# torch.distributions (Normal / MultivariateNormal rsample / log_prob); that
# distribution machinery is outside the forward pass and is not translated.

if __name__ == "__main__":
    # Shapes implied by the module: state_dim=16, layer_dim=32, action_dim=4.
    B, STATE_DIM, LAYER_DIM, ACTION_DIM = 8, 16, 32, 4

    key = jax.random.PRNGKey(0)
    pkey, xkey = jax.random.split(key)
    params = init_params(pkey, STATE_DIM, LAYER_DIM, ACTION_DIM)
    state = jax.random.normal(xkey, (B, STATE_DIM), jnp.float32)

    ref_mean, ref_std = _reference_forward(state, params)

    # f32 path (slab packed once, reused across calls)
    slab_f32 = pack_params(params)
    mean, std = policy_forward(state, slab_f32, action_dim=ACTION_DIM)
    jax.block_until_ready((mean, std))
    assert mean.shape == (B, ACTION_DIM) and std.shape == (B, ACTION_DIM)
    assert jnp.allclose(mean, ref_mean, atol=1e-4, rtol=1e-4)
    assert jnp.allclose(std, ref_std, atol=1e-4, rtol=1e-4)
    assert bool(jnp.all(std > 0.0))

    # bf16 MXU-operand path (v6e/v7x feedback) — f32 accumulation, looser tol.
    slab_bf16 = pack_params(params, compute_dtype=jnp.bfloat16)
    mean_b, std_b = policy_forward(state, slab_bf16, action_dim=ACTION_DIM)
    jax.block_until_ready((mean_b, std_b))
    assert jnp.allclose(mean_b, ref_mean, atol=5e-2, rtol=5e-2)
    assert jnp.allclose(std_b, ref_std, atol=5e-2, rtol=5e-2)

    # Larger batch exercising the multi-tile (grid >= 2, parallel axis) path.
    state_big = jax.random.normal(xkey, (300, STATE_DIM), jnp.float32)
    mean_big, std_big = policy_forward(state_big, slab_f32, action_dim=ACTION_DIM)
    jax.block_until_ready((mean_big, std_big))
    rm, rs = _reference_forward(state_big, params)
    assert jnp.allclose(mean_big, rm, atol=1e-4, rtol=1e-4)
    assert jnp.allclose(std_big, rs, atol=1e-4, rtol=1e-4)

    print("KERNEL_OK")
</pallas_src>

<mosaic_0001>
module attributes {stable_mosaic.version = 11 : i64} {
  func.func @_policy_kernel(%arg0: i32, %arg1: memref<128x8xf32, #tpu.memory_space<vmem>>, %arg2: memref<272x128xf32, #tpu.memory_space<vmem>>, %arg3: memref<16x8xf32, #tpu.memory_space<vmem>>) attributes {dimension_semantics = [#tpu.dimension_semantics<parallel>], iteration_bounds = array<i64: 1>, scalar_prefetch = 0 : i64, scratch_operands = 0 : i64, tpu.core_type = #tpu.core_type<tc>, window_params = [{transform_indices = @transform_0, window_bounds = array<i64: 128, 8>}, {pipeline_mode = #tpu.pipeline_mode<synchronous>, transform_indices = @transform_1, window_bounds = array<i64: 272, 128>}, {transform_indices = @transform_2, window_bounds = array<i64: 16, 8>}]} {
    %c0 = arith.constant 0 : index
    %c0_0 = arith.constant 0 : index
    %0 = vector.load %arg1[%c0, %c0_0] : memref<128x8xf32, #tpu.memory_space<vmem>>, vector<128x8xf32>
    %c0_1 = arith.constant 0 : index
    %c0_2 = arith.constant 0 : index
    %1 = vector.load %arg2[%c0_1, %c0_2] : memref<272x128xf32, #tpu.memory_space<vmem>>, vector<128x128xf32>
    %c128 = arith.constant 128 : index
    %c0_3 = arith.constant 0 : index
    %2 = vector.load %arg2[%c128, %c0_3] : memref<272x128xf32, #tpu.memory_space<vmem>>, vector<128x128xf32>
    %c256 = arith.constant 256 : index
    %c0_4 = arith.constant 0 : index
    %3 = vector.load %arg2[%c256, %c0_4] : memref<272x128xf32, #tpu.memory_space<vmem>>, vector<16x128xf32>
    %cst = arith.constant dense<0.000000e+00> : vector<128x8xf32>
    %4 = tpu.matmul %1, %0, %cst {dimension_numbers = #tpu.dot_dimension_numbers<[1], [0], [0], [1], [0, 0, 1, 1], [], []>} : vector<128x128xf32>, vector<128x8xf32>, vector<128x8xf32> -> vector<128x8xf32>
    %cst_5 = arith.constant 0.000000e+00 : f32
    %5 = vector.broadcast %cst_5 : f32 to vector<128x8xf32>
    %6 = arith.maximumf %4, %5 : vector<128x8xf32>
    %cst_6 = arith.constant dense<0.000000e+00> : vector<128x8xf32>
    %7 = tpu.matmul %2, %6, %cst_6 {dimension_numbers = #tpu.dot_dimension_numbers<[1], [0], [0], [1], [0, 0, 1, 1], [], []>} : vector<128x128xf32>, vector<128x8xf32>, vector<128x8xf32> -> vector<128x8xf32>
    %cst_7 = arith.constant 0.000000e+00 : f32
    %8 = vector.broadcast %cst_7 : f32 to vector<128x8xf32>
    %9 = arith.maximumf %7, %8 : vector<128x8xf32>
    %cst_8 = arith.constant dense<0.000000e+00> : vector<16x8xf32>
    %10 = tpu.matmul %3, %9, %cst_8 {dimension_numbers = #tpu.dot_dimension_numbers<[1], [0], [0], [1], [0, 0, 1, 1], [], []>} : vector<16x128xf32>, vector<128x8xf32>, vector<16x8xf32> -> vector<16x8xf32>
    %cst_9 = arith.constant -1.000000e+01 : f32
    %cst_10 = arith.constant 2.000000e+00 : f32
    %11 = vector.broadcast %cst_9 : f32 to vector<16x8xf32>
    %12 = arith.maximumf %11, %10 : vector<16x8xf32>
    %13 = vector.broadcast %cst_10 : f32 to vector<16x8xf32>
    %14 = arith.minimumf %13, %12 : vector<16x8xf32>
    %15 = math.exp %14 : vector<16x8xf32>
    %16 = math.log1p %15 : vector<16x8xf32>
    %17 = tpu.iota {dimensions = array<i32: 0>} : vector<16x8xi32>
    %c4_i32 = arith.constant 4 : i32
    %18 = vector.broadcast %c4_i32 : i32 to vector<16x8xi32>
    %19 = arith.cmpi slt, %17, %18 : vector<16x8xi32>
    %20 = arith.select %19, %10, %16 : vector<16x8xi1>, vector<16x8xf32>
    %c0_11 = arith.constant 0 : index
    %c0_12 = arith.constant 0 : index
    %21 = vector.load %arg3[%c0_11, %c0_12] : memref<16x8xf32, #tpu.memory_space<vmem>>, vector<16x8xf32>
    tpu.vector_store %arg3[%c0_11, %c0_12], %20 {strides = array<i32>} : memref<16x8xf32, #tpu.memory_space<vmem>>, vector<16x8xf32>,
    return
  }
  func.func @transform_0(%arg0: i32) -> (i32, i32) {
    %c0_i32 = arith.constant 0 : i32
    %c0_i32_0 = arith.constant 0 : i32
    return %c0_i32, %arg0 : i32, i32
  }
  func.func @transform_1(%arg0: i32) -> (i32, i32) {
    %c0_i32 = arith.constant 0 : i32
    %c0_i32_0 = arith.constant 0 : i32
    %c0_i32_1 = arith.constant 0 : i32
    return %c0_i32, %c0_i32_0 : i32, i32
  }
  func.func @transform_2(%arg0: i32) -> (i32, i32) {
    %c0_i32 = arith.constant 0 : i32
    %c0_i32_0 = arith.constant 0 : i32
    return %c0_i32, %arg0 : i32, i32
  }
}

</mosaic_0001>

<bundles_post_ra>
// kernel: tpu_custom_call.1
= control target key start
LH: loop header
LB: loop body
LE: loop exit
PB: predicated region body
PF: predicated region fallthrough
CT: control target
= control target key end

     0   :  { %7 = vsyncpa [#allocation3], 0  ;;  %s873_s9 = smov [#allocation2]   ;;  %s957_s0 = inlined_call_operand.vmem [shape: f32[128,8], index: 0, kind: input, shape index: {}]   ;;  %s958_s1 = inlined_call_operand.hbm [shape: f32[272,128], index: 1, kind: input, shape index: {}]   ;;  %s959_s2 = inlined_call_operand.vmem [shape: f32[16,8], index: 2, kind: output, shape index: {}]  }
   0x1   :  { %s15_s10 = sshll.u32 %s873_s9, 4  ;;  %s849_s13 = scalar_lea.hbm %s958_s1, 4352  ;;  %s16_s10 = int_to_ptr.vmem [resolvable:$true] %s15_s10 }
   0x2   :  { %p850_p0 = scmp.ne.s32.totalorder %s958_s1, %s849_s13  ;;  %p853_p1 = scmp.lt.u32.totalorder %s849_s13, %s958_s1 }
   0x4   :  { %p855_p2 = pnand %p853_p1, %p850_p0 }
   0x6   :  { %858 = shalt.err (!%p855_p2)
}
   0x7   :  { %s859_s18 = scalar_lea.vmem %s16_s10, 4352  ;;  %p864_p4 = scmp.lt.s32.totalorder %s16_s10, %s16_s10 }
   0x8   :  { %p860_p3 = scmp.ne.s32.totalorder %s16_s10, %s859_s18  ;;  %p865_p5 = scmp.lt.s32.totalorder %s859_s18, %s859_s18 }
   0xa   :  { %p866_p6 = por %p865_p5, %p864_p4 }
   0xc   :  { %p867_p7 = pnand %p866_p6, %p860_p3 }
   0xe   :  { %870 = shalt.err (!%p867_p7)
}
   0xf   :  { %s874_s19 = smov 128   ;;  %s875_s20 = smov 8  }
  0x10   :  { %21 = dma.hbm_to_vmem [thread:$0]  %s958_s1, 4352, %s16_s10, [#allocation3], %s874_s19, %s874_s19, %s875_s20  }
  0x11   :  { %871 = dma.done.wait [#allocation3], 4352  }
  0x12   :  { %872 = vsyncadd [#allocation3], 4294962944  ;;  %v25_v0 = vld [vmem:[%s957_s0] sm:$0xff]  ;;  %v26_v1 = vld [vmem:[%s957_s0 + $0x8] sm:$0xff]  ;;  %vm505_vm0 = vcmask 64512  }
  0x13   :  { %v27_v2 = vld [vmem:[%s957_s0 + $0x10] sm:$0xff]  ;;  %v742_v3 = vpack.c.bf16 %v26_v1, %v25_v0  ;;  %v28_v4 = vld [vmem:[%s957_s0 + $0x18] sm:$0xff]  ;;  %v29_v6 = vld [vmem:[%s957_s0 + $0x20] sm:$0xff] }
  0x14   :  { %v746_v5 = vpack.c.bf16 %v28_v4, %v27_v2  ;;  %v30_v7 = vld [vmem:[%s957_s0 + $0x28] sm:$0xff]  ;;  %v41_v9 = vld [vmem:[#allocation2] sm:$0xff]  ;;  %v31_v10 = vld [vmem:[%s957_s0 + $0x30] sm:$0xff] }
  0x15   :  { %743 = vmatprep.subr.bf16.mxu0 %v742_v3  ;;  %v750_v8 = vpack.c.bf16 %v30_v7, %v29_v6  ;;  %v32_v11 = vld [vmem:[%s957_s0 + $0x38] sm:$0xff]  ;;  %627 = vmatprep.mubr.f32.mxu0 %v41_v9  ;;  %v33_v13 = vld [vmem:[%s957_s0 + $0x40] sm:$0xff]  ;;  %v34_v14 = vld [vmem:[%s957_s0 + $0x48] sm:$0xff] }
  0x16   :  { %745 = vmatpush3.bf16.msra.mxu0 %v742_v3  ;;  %v754_v12 = vpack.c.bf16 %v32_v11, %v31_v10  ;;  %v758_v15 = vpack.c.bf16 %v34_v14, %v33_v13  ;;  %v35_v16 = vld [vmem:[%s957_s0 + $0x50] sm:$0xff]  ;;  %v36_v17 = vld [vmem:[%s957_s0 + $0x58] sm:$0xff]  ;;  %v37_v19 = vld [vmem:[%s957_s0 + $0x60] sm:$0xff] }
  0x17   :  { %747 = vmatprep.subr.bf16.mxu0 %v746_v5  ;;  %v762_v18 = vpack.c.bf16 %v36_v17, %v35_v16  ;;  %v38_v20 = vld [vmem:[%s957_s0 + $0x68] sm:$0xff]  ;;  %v39_v22 = vld [vmem:[%s957_s0 + $0x70] sm:$0xff]  ;;  %v40_v23 = vld [vmem:[%s957_s0 + $0x78] sm:$0xff] }
  0x18   :  { %v766_v21 = vpack.c.bf16 %v38_v20, %v37_v19  ;;  %v770_v24 = vpack.c.bf16 %v40_v23, %v39_v22  ;;  %v42_v25 = vld [vmem:[#allocation2 + $0x8] sm:$0xff]  ;;  %v43_v26 = vld [vmem:[#allocation2 + $0x10] sm:$0xff]  ;;  %v44_v27 = vld [vmem:[#allocation2 + $0x18] sm:$0xff] }
  0x19   :  { %v45_v28 = vld [vmem:[#allocation2 + $0x20] sm:$0xff]  ;;  %v46_v29 = vld [vmem:[#allocation2 + $0x28] sm:$0xff]  ;;  %v47_v30 = vld [vmem:[#allocation2 + $0x30] sm:$0xff] }
  0x1a   :  { %749 = vmatpush3.bf16.msra.mxu0 %v746_v5  ;;  %v48_v31 = vld [vmem:[#allocation2 + $0x38] sm:$0xff]  ;;  %v49_v32 = vld [vmem:[#allocation2 + $0x40] sm:$0xff]  ;;  %v50_v33 = vld [vmem:[#allocation2 + $0x48] sm:$0xff] }
  0x1b   :  { %751 = vmatprep.subr.bf16.mxu0 %v750_v8  ;;  %v51_v34 = vld [vmem:[#allocation2 + $0x50] sm:$0xff]  ;;  %v52_v35 = vld [vmem:[#allocation2 + $0x58] sm:$0xff]  ;;  %v53_v36 = vld [vmem:[#allocation2 + $0x60] sm:$0xff] }
  0x1c   :  { %v54_v37 = vld [vmem:[#allocation2 + $0x68] sm:$0xff]  ;;  %v55_v38 = vld [vmem:[#allocation2 + $0x70] sm:$0xff]  ;;  %v56_v39 = vld [vmem:[#allocation2 + $0x78] sm:$0xff] }
  0x1d   :  { %v57_v40 = vld [vmem:[#allocation2 + $0x80] sm:$0xff]  ;;  %v58_v17 = vld [vmem:[#allocation2 + $0x88] sm:$0xff]  ;;  %v60_v19 = vld [vmem:[#allocation2 + $0x98] sm:$0xff] }
  0x1e   :  { %753 = vmatpush3.bf16.msra.mxu0 %v750_v8  ;;  %683 = vmatprep.mubr.f32.mxu1 %v57_v40  ;;  %v61_v20 = vld [vmem:[#allocation2 + $0xa0] sm:$0xff]  ;;  %v63_v22 = vld [vmem:[#allocation2 + $0xb0] sm:$0xff]  ;;  %v64_v23 = vld [vmem:[#allocation2 + $0xb8] sm:$0xff] }
  0x1f   :  { %755 = vmatprep.subr.bf16.mxu0 %v754_v12 }
  0x22   :  { %757 = vmatpush3.bf16.msra.mxu0 %v754_v12 }
  0x23   :  { %759 = vmatprep.subr.bf16.mxu0 %v758_v15 }
  0x26   :  { %761 = vmatpush3.bf16.msra.mxu0 %v758_v15 }
  0x27   :  { %763 = vmatprep.subr.bf16.mxu0 %v762_v18 }
  0x2a   :  { %765 = vmatpush3.bf16.msra.mxu0 %v762_v18  ;;  %v59_v18 = vld [vmem:[#allocation2 + $0x90] sm:$0xff] }
  0x2b   :  { %767 = vmatprep.subr.bf16.mxu0 %v766_v21 }
  0x2e   :  { %769 = vmatpush3.bf16.msra.mxu0 %v766_v21  ;;  %v62_v21 = vld [vmem:[#allocation2 + $0xa8] sm:$0xff] }
  0x2f   :  { %771 = vmatprep.subr.bf16.mxu0 %v770_v24 }
  0x32   :  { %773 = vmatpush3.bf16.msra.mxu0 %v770_v24  ;;  %v65_v24 = vld [vmem:[#allocation2 + $0xc0] sm:$0xff] }
  0x35   :  { %628 = vmatmul.mubr.f32.vlgmr.msra.gmra.mrb[0].mxu0 %v42_v25  ;;  %v66_v25 = vld [vmem:[#allocation2 + $0xc8] sm:$0xff] }
  0x36   :  { %630 = vmatprep.mubr.f32.mxu0 %v43_v26  ;;  %v67_v26 = vld [vmem:[#allocation2 + $0xd0] sm:$0xff] }
  0x39   :  { %631 = vmatmul.mubr.f32.gmra.mrb[2].mxu0 %v44_v27  ;;  %v68_v27 = vld [vmem:[#allocation2 + $0xd8] sm:$0xff] }
  0x3a   :  { %633 = vmatprep.mubr.f32.mxu0 %v45_v28  ;;  %v69_v28 = vld [vmem:[#allocation2 + $0xe0] sm:$0xff] }
  0x3d   :  { %634 = vmatmul.mubr.f32.gmra.mrb[4].mxu0 %v46_v29  ;;  %v70_v29 = vld [vmem:[#allocation2 + $0xe8] sm:$0xff] }
  0x3e   :  { %636 = vmatprep.mubr.f32.mxu0 %v47_v30  ;;  %v71_v30 = vld [vmem:[#allocation2 + $0xf0] sm:$0xff] }
  0x41   :  { %637 = vmatmul.mubr.f32.gmra.mrb[6].mxu0 %v48_v31  ;;  %v72_v31 = vld [vmem:[#allocation2 + $0xf8] sm:$0xff] }
  0x42   :  { %639 = vmatprep.mubr.f32.mxu0 %v49_v32  ;;  %v73_v32 = vld [vmem:[#allocation2 + $0x100] sm:$0xff] }
  0x45   :  { %640 = vmatmul.mubr.f32.gmra.mrb[8].mxu0 %v50_v33 }
  0x46   :  { %642 = vmatprep.mubr.f32.mxu0 %v51_v34 }
  0x49   :  { %643 = vmatmul.mubr.f32.gmra.mrb[10].mxu0 %v52_v35 }
  0x4a   :  { %645 = vmatprep.mubr.f32.mxu0 %v53_v36 }
  0x4d   :  { %646 = vmatmul.mubr.f32.gmra.mrb[12].mxu0 %v54_v37 }
  0x4e   :  { %648 = vmatprep.mubr.f32.mxu0 %v55_v38 }
  0x51   :  { %649 = vmatmul.mubr.f32.gmra.mrb[14].mxu0 %v56_v39 }
  0x52   :  { %739 = vmatprep.mubr.f32.mxu0 %v73_v32 }
 0x108   :  { %v629_v41 = vpop.f32.mrb[0].mxu0 }
 0x109   :  { %v221_v42 = vmax.f32 %v629_v41, 0.0  ;;  %v141_v43 = vpop.f32.mrb[1].mxu0 }
 0x10a   :  { %v220_v44 = vmax.f32 %v141_v43, 0.0 }
 0x10c   :  { %v632_v45 = vpop.f32.mrb[2].mxu0  ;;  %v774_v46 = vpack.c.bf16 %v221_v42, %v220_v44 }
 0x10d   :  { %v223_v47 = vmax.f32 %v632_v45, 0.0  ;;  %v151_v48 = vpop.f32.mrb[3].mxu0 }
 0x10e   :  { %v222_v49 = vmax.f32 %v151_v48, 0.0  ;;  %775 = vmatprep.subr.bf16.mxu1 %v774_v46 }
 0x10f   :  { %777 = vmatpush3.bf16.msra.mxu1 %v774_v46 }
 0x110   :  { %v778_v50 = vpack.c.bf16 %v223_v47, %v222_v49  ;;  %v635_v51 = vpop.f32.mrb[4].mxu0 }
 0x111   :  { %v225_v52 = vmax.f32 %v635_v51, 0.0  ;;  %v161_v53 = vpop.f32.mrb[5].mxu0 }
 0x112   :  { %v224_v54 = vmax.f32 %v161_v53, 0.0  ;;  %779 = vmatprep.subr.bf16.mxu1 %v778_v50 }
 0x113   :  { %781 = vmatpush3.bf16.msra.mxu1 %v778_v50 }
 0x114   :  { %v782_v55 = vpack.c.bf16 %v225_v52, %v224_v54  ;;  %v638_v56 = vpop.f32.mrb[6].mxu0 }
 0x115   :  { %v227_v57 = vmax.f32 %v638_v56, 0.0  ;;  %v171_v58 = vpop.f32.mrb[7].mxu0 }
 0x116   :  { %v226_v59 = vmax.f32 %v171_v58, 0.0  ;;  %783 = vmatprep.subr.bf16.mxu1 %v782_v55 }
 0x117   :  { %785 = vmatpush3.bf16.msra.mxu1 %v782_v55 }
 0x118   :  { %v786_v60 = vpack.c.bf16 %v227_v57, %v226_v59  ;;  %v641_v61 = vpop.f32.mrb[8].mxu0 }
 0x119   :  { %v229_v62 = vmax.f32 %v641_v61, 0.0  ;;  %v181_v63 = vpop.f32.mrb[9].mxu0 }
 0x11a   :  { %v228_v0 = vmax.f32 %v181_v63, 0.0  ;;  %787 = vmatprep.subr.bf16.mxu1 %v786_v60 }
 0x11b   :  { %789 = vmatpush3.bf16.msra.mxu1 %v786_v60 }
 0x11c   :  { %v790_v1 = vpack.c.bf16 %v229_v62, %v228_v0  ;;  %v644_v2 = vpop.f32.mrb[10].mxu0 }
 0x11d   :  { %v231_v3 = vmax.f32 %v644_v2, 0.0  ;;  %v191_v4 = vpop.f32.mrb[11].mxu0 }
 0x11e   :  { %v230_v5 = vmax.f32 %v191_v4, 0.0  ;;  %791 = vmatprep.subr.bf16.mxu1 %v790_v1 }
 0x11f   :  { %793 = vmatpush3.bf16.msra.mxu1 %v790_v1 }
 0x120   :  { %v794_v6 = vpack.c.bf16 %v231_v3, %v230_v5  ;;  %v647_v7 = vpop.f32.mrb[12].mxu0 }
 0x121   :  { %v233_v8 = vmax.f32 %v647_v7, 0.0  ;;  %v201_v9 = vpop.f32.mrb[13].mxu0 }
 0x122   :  { %v232_v10 = vmax.f32 %v201_v9, 0.0  ;;  %795 = vmatprep.subr.bf16.mxu1 %v794_v6  ;;  %v74_v9 = vld [vmem:[#allocation2 + $0x108] sm:$0xff] }
 0x123   :  { %797 = vmatpush3.bf16.msra.mxu1 %v794_v6 }
 0x124   :  { %v798_v11 = vpack.c.bf16 %v233_v8, %v232_v10  ;;  %v650_v12 = vpop.f32.mrb[14].mxu0 }
 0x125   :  { %v235_v13 = vmax.f32 %v650_v12, 0.0  ;;  %v211_v14 = vpop.f32.mrb[15].mxu0 }
 0x126   :  { %v234_v15 = vmax.f32 %v211_v14, 0.0  ;;  %799 = vmatprep.subr.bf16.mxu1 %v798_v11 }
 0x127   :  { %801 = vmatpush3.bf16.msra.mxu1 %v798_v11 }
 0x128   :  { %v802_v16 = vpack.c.bf16 %v235_v13, %v234_v15 }
 0x12a   :  { %803 = vmatprep.subr.bf16.mxu1 %v802_v16 }
 0x12b   :  { %805 = vmatpush3.bf16.msra.mxu1 %v802_v16 }
 0x12e   :  { %684 = vmatmul.mubr.f32.vlgmr.msra.gmra.mrb[0].mxu1 %v58_v17 }
 0x12f   :  { %686 = vmatprep.mubr.f32.mxu1 %v59_v18 }
 0x132   :  { %687 = vmatmul.mubr.f32.gmra.mrb[2].mxu1 %v60_v19 }
 0x133   :  { %689 = vmatprep.mubr.f32.mxu1 %v61_v20 }
 0x136   :  { %690 = vmatmul.mubr.f32.gmra.mrb[4].mxu1 %v62_v21 }
 0x137   :  { %692 = vmatprep.mubr.f32.mxu1 %v63_v22 }
 0x13a   :  { %693 = vmatmul.mubr.f32.gmra.mrb[6].mxu1 %v64_v23 }
 0x13b   :  { %695 = vmatprep.mubr.f32.mxu1 %v65_v24  ;;  %v498_v24 = vlaneseq }
 0x13e   :  { %696 = vmatmul.mubr.f32.gmra.mrb[8].mxu1 %v66_v25 }
 0x13f   :  { %698 = vmatprep.mubr.f32.mxu1 %v67_v26 }
 0x142   :  { %699 = vmatmul.mubr.f32.gmra.mrb[10].mxu1 %v68_v27 }
 0x143   :  { %701 = vmatprep.mubr.f32.mxu1 %v69_v28  ;;  %v499_v28 = vshrl.u32 %v498_v24, 7 }
 0x145   :  { %vm501_vm2 = vcmp.lt.s32.totalorder %v499_v28, 4 }
 0x146   :  { %702 = vmatmul.mubr.f32.gmra.mrb[12].mxu1 %v70_v29 }
 0x147   :  { %704 = vmatprep.mubr.f32.mxu1 %v71_v30 }
 0x14a   :  { %705 = vmatmul.mubr.f32.gmra.mrb[14].mxu1 %v72_v31 }
 0x201   :  { %v685_v33 = vpop.f32.mrb[0].mxu1 }
 0x202   :  { %v382_v34 = vmax.f32 %v685_v33, 0.0  ;;  %v302_v35 = vpop.f32.mrb[1].mxu1 }
 0x203   :  { %v381_v36 = vmax.f32 %v302_v35, 0.0 }
 0x205   :  { %v806_v37 = vpack.c.bf16 %v382_v34, %v381_v36  ;;  %v688_v38 = vpop.f32.mrb[2].mxu1 }
 0x206   :  { %v384_v39 = vmax.f32 %v688_v38, 0.0  ;;  %v312_v40 = vpop.f32.mrb[3].mxu1 }
 0x207   :  { %v383_v41 = vmax.f32 %v312_v40, 0.0  ;;  %807 = vmatprep.subr.bf16.mxu0 %v806_v37 }
 0x208   :  { %809 = vmatpush3.bf16.msra.mxu0 %v806_v37 }
 0x209   :  { %v810_v42 = vpack.c.bf16 %v384_v39, %v383_v41  ;;  %v691_v43 = vpop.f32.mrb[4].mxu1 }
 0x20a   :  { %v386_v44 = vmax.f32 %v691_v43, 0.0  ;;  %v322_v45 = vpop.f32.mrb[5].mxu1 }
 0x20b   :  { %v385_v46 = vmax.f32 %v322_v45, 0.0  ;;  %811 = vmatprep.subr.bf16.mxu0 %v810_v42 }
 0x20c   :  { %813 = vmatpush3.bf16.msra.mxu0 %v810_v42 }
 0x20d   :  { %v814_v47 = vpack.c.bf16 %v386_v44, %v385_v46  ;;  %v694_v48 = vpop.f32.mrb[6].mxu1 }
 0x20e   :  { %v388_v49 = vmax.f32 %v694_v48, 0.0  ;;  %v332_v50 = vpop.f32.mrb[7].mxu1 }
 0x20f   :  { %v387_v51 = vmax.f32 %v332_v50, 0.0  ;;  %815 = vmatprep.subr.bf16.mxu0 %v814_v47 }
 0x210   :  { %817 = vmatpush3.bf16.msra.mxu0 %v814_v47 }
 0x211   :  { %v818_v52 = vpack.c.bf16 %v388_v49, %v387_v51  ;;  %v697_v53 = vpop.f32.mrb[8].mxu1 }
 0x212   :  { %v390_v54 = vmax.f32 %v697_v53, 0.0  ;;  %v342_v55 = vpop.f32.mrb[9].mxu1 }
 0x213   :  { %v389_v56 = vmax.f32 %v342_v55, 0.0  ;;  %819 = vmatprep.subr.bf16.mxu0 %v818_v52 }
 0x214   :  { %821 = vmatpush3.bf16.msra.mxu0 %v818_v52 }
 0x215   :  { %v822_v57 = vpack.c.bf16 %v390_v54, %v389_v56  ;;  %v700_v58 = vpop.f32.mrb[10].mxu1 }
 0x216   :  { %v392_v59 = vmax.f32 %v700_v58, 0.0  ;;  %v352_v60 = vpop.f32.mrb[11].mxu1 }
 0x217   :  { %v391_v61 = vmax.f32 %v352_v60, 0.0  ;;  %823 = vmatprep.subr.bf16.mxu0 %v822_v57 }
 0x218   :  { %825 = vmatpush3.bf16.msra.mxu0 %v822_v57 }
 0x219   :  { %v826_v62 = vpack.c.bf16 %v392_v59, %v391_v61  ;;  %v703_v63 = vpop.f32.mrb[12].mxu1 }
 0x21a   :  { %v394_v0 = vmax.f32 %v703_v63, 0.0  ;;  %v362_v1 = vpop.f32.mrb[13].mxu1 }
 0x21b   :  { %v393_v2 = vmax.f32 %v362_v1, 0.0  ;;  %827 = vmatprep.subr.bf16.mxu0 %v826_v62 }
 0x21c   :  { %829 = vmatpush3.bf16.msra.mxu0 %v826_v62 }
 0x21d   :  { %v830_v3 = vpack.c.bf16 %v394_v0, %v393_v2  ;;  %v706_v4 = vpop.f32.mrb[14].mxu1 }
 0x21e   :  { %v396_v5 = vmax.f32 %v706_v4, 0.0  ;;  %v372_v6 = vpop.f32.mrb[15].mxu1 }
 0x21f   :  { %v395_v7 = vmax.f32 %v372_v6, 0.0  ;;  %831 = vmatprep.subr.bf16.mxu0 %v830_v3 }
 0x220   :  { %833 = vmatpush3.bf16.msra.mxu0 %v830_v3 }
 0x221   :  { %v834_v8 = vpack.c.bf16 %v396_v5, %v395_v7 }
 0x223   :  { %835 = vmatprep.subr.bf16.mxu0 %v834_v8 }
 0x224   :  { %837 = vmatpush3.bf16.msra.mxu0 %v834_v8 }
 0x227   :  { %740 = vmatmul.mubr.f32.vlgmr.msra.gmra.mrb[16].mxu0 %v74_v9 }
 0x2fa   :  { %v741_v10 = vpop.f32.mrb[16].mxu0 }
 0x2fb   :  { %v473_v11 = vmax.f32 %v741_v10, -10.0  ;;  %v463_v12 = vpop.f32.mrb[17].mxu0 }
 0x2fc   :  { %v472_v13 = vmax.f32 %v463_v12, -10.0 }
 0x2fd   :  { %v475_v14 = vmin.f32 %v473_v11, 2.0 }
 0x2fe   :  { %v474_v15 = vmin.f32 %v472_v13, 2.0 }
 0x2ff   :  { %v478_v16 = vmul.f32 1.442695, %v475_v14 }
 0x300   :  { %v476_v17 = vmul.f32 1.442695, %v474_v15 }
 0x301   :  { %841 = vpow2.f32 %v478_v16 }
 0x302   :  { %843 = vpow2.f32 %v476_v17 }
 0x30b   :  { %v842_v18 = vpop.eup %841 }
 0x30c   :  { %v844_v19 = vpop.eup %843  ;;  %v489_v20 = vadd.f32 1.0, %v842_v18  ;;  %v492_v22 = vmul.f32 -0.5, %v842_v18  ;;  %v495_v27 = vand.u32 2147483647, %v842_v18 }
 0x30d   :  { %v480_v21 = vadd.f32 1.0, %v844_v19  ;;  %v483_v23 = vmul.f32 -0.5, %v844_v19  ;;  %v486_v29 = vand.u32 2147483647, %v844_v19 }
 0x30e   :  { %845 = vlog2.f32 %v489_v20  ;;  %v493_v25 = vadd.f32 1.0, %v492_v22  ;;  %vm496_vm1 = vcmp.lt.f32.partialorder %v495_v27, 0.0004427343 }
 0x30f   :  { %847 = vlog2.f32 %v480_v21  ;;  %v484_v26 = vadd.f32 1.0, %v483_v23  ;;  %vm487_vm3 = vcmp.lt.f32.partialorder %v486_v29, 0.0004427343 }
 0x310   :  { %v494_v33 = vmul.f32 %v842_v18, %v493_v25 }
 0x311   :  { %v485_v35 = vmul.f32 %v844_v19, %v484_v26 }
 0x318   :  { %v846_v30 = vpop.eup %845 }
 0x319   :  { %v848_v31 = vpop.eup %847  ;;  %v491_v32 = vmul.f32 0.6931472, %v846_v30 }
 0x31a   :  { %v482_v34 = vmul.f32 0.6931472, %v848_v31 }
 0x31b   :  { %v497_v36 = vsel %vm496_vm1, %v494_v33, %v491_v32 }
 0x31c   :  { %v488_v37 = vsel %vm487_vm3, %v485_v35, %v482_v34  ;;  %507 = vst.msk [vmem:[%s959_s2 + $0x8] sm:$0xff] %vm505_vm0, %v497_v36 }
 0x31d   :  { %v503_v38 = vsel %vm501_vm2, %v463_v12, %v488_v37 }
 0x31e   :  { %506 = vst.msk [vmem:[%s959_s2] sm:$0xff] %vm505_vm0, %v503_v38 }
 0x31f   :  { %512 = vsyncpa [#allocation3], 1 }

</bundles_post_ra>
